<compile_context>
chip_gen: v7x
topology: tpu7x:2x2x1
jax: 0.10.0
libtpu: 0.0.40
codegen_flags: <defaults>
</compile_context>

<pallas_src>
import functools

import numpy as np

import jax
import jax.numpy as jnp
from jax.experimental import pallas as pl
from jax.experimental.pallas import tpu as pltpu


# The 9 coarse-grid shifts (delta_row, delta_col) used by the sub-pixel 3x3 conv.
_SHIFTS = ((-1, -1), (-1, 0), (-1, 1),
           (0, -1), (0, 0), (0, 1),
           (1, -1), (1, 0), (1, 1))


# ----------------------------------------------------------------------------
# pltpu.roll direction probe (run once, eagerly, before any jit tracing).
# ----------------------------------------------------------------------------
@functools.lru_cache(maxsize=None)
def _roll_sign():
    """+1 if pltpu.roll matches jnp.roll (element i moves to i+shift), else -1."""
    def k(x_ref, o_ref):
        o_ref[...] = pltpu.roll(x_ref[...], shift=1, axis=1)

    x = jax.lax.broadcasted_iota(jnp.float32, (8, 128), 1)
    y = pl.pallas_call(k, out_shape=jax.ShapeDtypeStruct((8, 128), jnp.float32))(x)
    return 1 if float(y[0, 0]) == 127.0 else -1


# ----------------------------------------------------------------------------
# Fused per-module Pallas kernel
# ----------------------------------------------------------------------------
def _upsample_kernel(x_ref, w1_ref, b1_ref, w2_ref, b2_ref, mask_ref, o_ref, *,
                     W, relu2, roll_sign):
    """One whole UpSamplingModule on a block of whole images.

    x_ref   : (Rin*Cin, TM)  bf16  input sub-position planes (coarse pixels on lanes)
    w1_ref  : (P, Rin*Cin)   bf16  deconv weight (BN1 scale folded), P = 4*Rin*Cout
    b1_ref  : (P, 1)         f32   deconv bias + BN1 shift
    w2_ref  : (9, P, P)      bf16  3x3 conv: one (P, P) block per coarse shift
    b2_ref  : (P, 1)         f32   conv bias + BN2 shift
    mask_ref: (9, TM)        bf16  precomputed boundary masks (resident)
    o_ref   : (P, TM)        bf16  output sub-position planes
    """
    M = x_ref.shape[-1]

    # --- ConvTranspose2d(k=2,s=2) + bias + BN + ReLU: one MXU matmul.
    d = jnp.dot(w1_ref[...], x_ref[...], preferred_element_type=jnp.float32)
    d = jnp.maximum(d + b1_ref[...], 0.0).astype(jnp.bfloat16)          # (P, M)

    # --- Conv2d(3x3, pad=1) on the virtual upsampled image: 9 lane-rolled,
    # boundary-masked copies of d, each contracted with its own (P, P) weight
    # block and accumulated in f32 (no (9P, M) concat is ever materialized).
    acc = None
    for k, (di, dj) in enumerate(_SHIFTS):
        s = di * W + dj
        if s == 0:
            t = d
        else:
            # t[:, m] = d[:, m + s]  (wrapped lanes are zeroed by the mask)
            t = pltpu.roll(d, shift=(-roll_sign * s) % M, axis=1)
        if (di, dj) != (0, 0):
            t = t * mask_ref[pl.ds(k, 1), :]                     # one vmul / shift
        y = jnp.dot(w2_ref[k], t, preferred_element_type=jnp.float32)
        acc = y if acc is None else acc + y

    acc = acc + b2_ref[...]
    if relu2:
        acc = jnp.maximum(acc, 0.0)
    o_ref[...] = acc.astype(o_ref.dtype)


# ----------------------------------------------------------------------------
# Host-side (one-time) weight folding: bias + BatchNorm + plane nesting.
# ----------------------------------------------------------------------------
def _bn_fold_np(gamma, beta, mean, var, eps=1e-5):
    gamma = np.asarray(gamma, np.float32)
    beta = np.asarray(beta, np.float32)
    mean = np.asarray(mean, np.float32)
    var = np.asarray(var, np.float32)
    scale = gamma / np.sqrt(var + eps)
    return scale, beta - mean * scale


def _fold_module_params(p, r):
    """Fold one UpSamplingModule for input with r*r sub-position planes/channel.

    Input row layout:  (u*r + v)*Cin + ci     (true pixel (r*i+u, r*j+v))
    Output row layout: (pp*2r + qq)*Cout + co (true pixel (2r*i+pp, 2r*j+qq))
    """
    Cin, Cout = p["wt"].shape[0], p["wt"].shape[1]
    rp = 2 * r
    p_in, p_out = r * r * Cin, rp * rp * Cout

    wt = np.asarray(p["wt"], np.float32)                    # (Cin, Cout, 2, 2)
    bt = np.asarray(p["bt"], np.float32)
    s1, t1 = _bn_fold_np(p["bn1_gamma"], p["bn1_beta"], p["bn1_mean"], p["bn1_var"])

    # Deconv as a block-diagonal (over input planes) matmul.
    w1 = np.zeros((p_out, p_in), np.float32)
    for u in range(r):
        for v in range(r):
            for a in range(2):
                for b in range(2):
                    row = ((2 * u + a) * rp + (2 * v + b)) * Cout
                    col = (u * r + v) * Cin
                    w1[row:row + Cout, col:col + Cin] = wt[:, :, a, b].T * s1[:, None]
    b1 = np.tile(bt * s1 + t1, rp * rp)[:, None]

    relu2 = "bn2_gamma" in p
    if relu2:
        s2, t2 = _bn_fold_np(p["bn2_gamma"], p["bn2_beta"], p["bn2_mean"], p["bn2_var"])
    else:
        s2 = np.ones((Cout,), np.float32)
        t2 = np.zeros((Cout,), np.float32)
    wc = np.asarray(p["wc"], np.float32) * s2[:, None, None, None]   # (Cout,Cout,3,3)
    b2 = np.tile(np.asarray(p["bc"], np.float32) * s2 + t2, rp * rp)[:, None]

    # 3x3 conv (pad=1) on the virtual (rp*H, rp*W) image, decomposed per coarse
    # shift (di, dj) in {-1,0,1}^2:
    #   output plane (pp, qq) pulls plane (p2, q2) of coarse neighbour (di, dj),
    #   where pp + dy - 1 = rp*di + p2 and qq + dx - 1 = rp*dj + q2.
    shift_idx = {sh: k for k, sh in enumerate(_SHIFTS)}
    w2 = np.zeros((9, p_out, p_out), np.float32)
    for pp in range(rp):
        for qq in range(rp):
            row = (pp * rp + qq) * Cout
            for dy in range(3):
                for dx in range(3):
                    a, b = pp + dy - 1, qq + dx - 1
                    di, p2 = a // rp, a % rp
                    dj, q2 = b // rp, b % rp
                    col = (p2 * rp + q2) * Cout
                    w2[shift_idx[(di, dj)], row:row + Cout, col:col + Cout] = wc[:, :, dy, dx]

    return (jnp.asarray(w1, jnp.bfloat16), jnp.asarray(b1, jnp.float32),
            jnp.asarray(w2, jnp.bfloat16), jnp.asarray(b2, jnp.float32), relu2)


def _build_masks(nb, H, W):
    """(9, nb*H*W) bf16 boundary masks for the 9 coarse shifts (trace-time const)."""
    m = np.arange(nb * H * W)
    jj, ii = m % W, (m // W) % H
    masks = np.ones((9, m.size), np.float32)
    for k, (di, dj) in enumerate(_SHIFTS):
        ok = np.ones(m.size, bool)
        if di:
            ok &= (ii + di >= 0) & (ii + di < H)
        if dj:
            ok &= (jj + dj >= 0) & (jj + dj < W)
        masks[k] = ok
    return jnp.asarray(masks, jnp.bfloat16)


# ----------------------------------------------------------------------------
# Generation-aware tiling / VMEM budget
# ----------------------------------------------------------------------------
def _tpu_vmem_capacity_bytes():
    try:
        return int(pltpu.get_tpu_info().vmem_capacity_bytes)
    except Exception:
        return 64 << 20          # conservative fallback (v7x physical VMEM)


def _pick_image_block(N, HW, rows_in, rows_out, lane_budget_bytes):
    """#images per grid step: lane axis a multiple of 128, per-step footprint
    inside the VMEM budget, and prefer a grid of length >= 2 (v7x megacore
    sharding + DMA/compute overlap on every generation)."""
    # Approx bytes per lane per step: double-buffered bf16 in/out blocks plus
    # bf16 deconv output, one rolled/masked bf16 piece, f32 accumulator and
    # f32 matmul result.  Weights/masks are small and counted separately.
    bpl = (2 * 2 * rows_in + 2 * 2 * rows_out
           + 2 * rows_out + 2 * rows_out + 4 * rows_out + 4 * rows_out)
    max_lanes = min(32768, max(128, lane_budget_bytes // max(bpl, 1)))
    best = None
    for nb in range(1, N + 1):
        if N % nb:
            continue
        lanes = nb * HW
        if lanes % 128 or lanes > max_lanes:
            continue
        key = (N // nb >= 2, lanes)          # prefer grid>=2, then widest block
        if best is None or key > best[0]:
            best = (key, nb)
    if best is not None:
        return best[1]
    # Fallback: whole batch in one block (always legal; may hit masked stores).
    # TODO(synk): pad N*H*W up to a multiple of 128 instead of falling back.
    return N


# ----------------------------------------------------------------------------
# pallas_call wrapper (one call per UpSamplingModule)
# ----------------------------------------------------------------------------
def _fused_upsample(x, w1, b1, w2, b2, masks, *, TM, W, relu2, roll_sign,
                    vmem_limit_bytes):
    rows_in, Mtot = x.shape
    P = w1.shape[0]
    grid = (Mtot // TM,)
    kernel = functools.partial(_upsample_kernel, W=W, relu2=relu2,
                               roll_sign=roll_sign)
    return pl.pallas_call(
        kernel,
        out_shape=jax.ShapeDtypeStruct((P, Mtot), jnp.bfloat16),
        grid_spec=pltpu.PrefetchScalarGridSpec(
            num_scalar_prefetch=0,
            grid=grid,
            in_specs=[
                pl.BlockSpec((rows_in, TM), lambda g: (0, g)),   # streamed activations
                # Constant index_maps: weights & masks stay VMEM resident.
                pl.BlockSpec(w1.shape, lambda g: (0, 0)),
                pl.BlockSpec(b1.shape, lambda g: (0, 0)),
                pl.BlockSpec(w2.shape, lambda g: (0, 0, 0)),
                pl.BlockSpec(b2.shape, lambda g: (0, 0)),
                pl.BlockSpec(masks.shape, lambda g: (0, 0)),
            ],
            out_specs=pl.BlockSpec((P, TM), lambda g: (0, g)),
        ),
        compiler_params=pltpu.CompilerParams(
            dimension_semantics=("parallel",),
            vmem_limit_bytes=vmem_limit_bytes),
    )(x, w1, b1, w2, b2, masks)


# ----------------------------------------------------------------------------
# Decoder forward builder: fold once on the host, jit a thin forward.
# ----------------------------------------------------------------------------
def make_decoder_forward(params, N, H, W):
    roll_sign = _roll_sign()                 # eager probe (cached)

    folded, r = [], 1
    rows_in = rows_out = 1
    for p in params:
        w1, b1, w2, b2, relu2 = _fold_module_params(p, r)
        folded.append((w1, b1, w2, b2, relu2))
        rows_in = max(rows_in, w1.shape[1])
        rows_out = max(rows_out, w1.shape[0])
        r *= 2
    rL = r
    C0 = params[0]["wt"].shape[0]

    vmem_cap = _tpu_vmem_capacity_bytes()
    lane_budget = int(vmem_cap * 0.35)
    vmem_limit = int(min(vmem_cap * 3 // 4, 112 << 20))

    nb = _pick_image_block(N, H * W, rows_in, rows_out, lane_budget)
    TM = nb * H * W
    masks = _build_masks(nb, H, W)

    @jax.jit
    def forward(x_nchw):
        # NCHW -> channels on sublanes, flattened (n, i, j) pixels on lanes.
        x = jnp.transpose(x_nchw, (1, 0, 2, 3)).reshape(C0, N * H * W)
        x = x.astype(jnp.bfloat16)
        for (w1, b1, w2, b2, relu2) in folded:
            x = _fused_upsample(x, w1, b1, w2, b2, masks, TM=TM, W=W,
                                relu2=relu2, roll_sign=roll_sign,
                                vmem_limit_bytes=vmem_limit)
        # Single final interleave of the rL x rL sub-position planes (fused with
        # the f32 cast); no per-module transpose round-trips through HBM.
        Cl = x.shape[0] // (rL * rL)
        out = x.reshape(rL, rL, Cl, N, H, W).transpose(3, 2, 4, 0, 5, 1)
        return out.reshape(N, Cl, rL * H, rL * W).astype(jnp.float32)

    return forward


# ----------------------------------------------------------------------------
# Parameter construction (deterministic, shapes match the PyTorch module)
# ----------------------------------------------------------------------------
def init_decoder_params(key, in_channels, layers_number=2):
    params = []
    c = in_channels
    for i in range(layers_number):
        cout = c // 2
        is_last = i == layers_number - 1
        key, *ks = jax.random.split(key, 13)
        p = {
            # nn.ConvTranspose2d(c, cout, kernel_size=2, stride=2): (c, cout, 2, 2)
            "wt": 0.1 * jax.random.normal(ks[0], (c, cout, 2, 2), jnp.float32),
            "bt": 0.1 * jax.random.normal(ks[1], (cout,), jnp.float32),
            # nn.BatchNorm2d(cout) after the transposed conv
            "bn1_gamma": 1.0 + 0.1 * jax.random.normal(ks[2], (cout,), jnp.float32),
            "bn1_beta": 0.1 * jax.random.normal(ks[3], (cout,), jnp.float32),
            "bn1_mean": 0.1 * jax.random.normal(ks[4], (cout,), jnp.float32),
            "bn1_var": jnp.abs(1.0 + 0.1 * jax.random.normal(ks[5], (cout,), jnp.float32)),
            # nn.Conv2d(cout, cout, kernel_size=3, padding=1): (cout, cout, 3, 3)
            "wc": 0.1 * jax.random.normal(ks[6], (cout, cout, 3, 3), jnp.float32),
            "bc": 0.1 * jax.random.normal(ks[7], (cout,), jnp.float32),
        }
        if not is_last:
            p["bn2_gamma"] = 1.0 + 0.1 * jax.random.normal(ks[8], (cout,), jnp.float32)
            p["bn2_beta"] = 0.1 * jax.random.normal(ks[9], (cout,), jnp.float32)
            p["bn2_mean"] = 0.1 * jax.random.normal(ks[10], (cout,), jnp.float32)
            p["bn2_var"] = jnp.abs(1.0 + 0.1 * jax.random.normal(ks[11], (cout,), jnp.float32))
        params.append(p)
        c = cout
    return params


# ----------------------------------------------------------------------------
# Plain-JAX f32 reference (definitional einsums) for a sanity check
# ----------------------------------------------------------------------------
def _upsampling_ref(x, p):
    N, H, W, _ = x.shape
    Cout = p["wt"].shape[1]
    y = jnp.einsum("nhwc,cdab->nhawbd", x, p["wt"]).reshape(N, 2 * H, 2 * W, Cout)
    y = y + p["bt"]
    y = (y - p["bn1_mean"]) / jnp.sqrt(p["bn1_var"] + 1e-5) * p["bn1_gamma"] + p["bn1_beta"]
    y = jnp.maximum(y, 0.0)

    H2, W2 = 2 * H, 2 * W
    xp = jnp.pad(y, ((0, 0), (1, 1), (1, 1), (0, 0)))
    acc = jnp.zeros((N, H2, W2, Cout), jnp.float32)
    for dy in range(3):
        for dx in range(3):
            acc = acc + jnp.einsum("nhwc,oc->nhwo",
                                   xp[:, dy:dy + H2, dx:dx + W2, :],
                                   p["wc"][:, :, dy, dx])
    z = acc + p["bc"]
    if "bn2_gamma" in p:
        z = (z - p["bn2_mean"]) / jnp.sqrt(p["bn2_var"] + 1e-5) * p["bn2_gamma"] + p["bn2_beta"]
        z = jnp.maximum(z, 0.0)
    return z


def decoder_ref(x_nchw, params):
    x = jnp.transpose(x_nchw, (0, 2, 3, 1))
    for p in params:
        x = _upsampling_ref(x, p)
    return jnp.transpose(x, (0, 3, 1, 2))


# ----------------------------------------------------------------------------
if __name__ == "__main__":
    key = jax.random.PRNGKey(0)
    k_in, k_par = jax.random.split(key)

    # Decoder(in_channels=16, layers_number=2), NCHW input.
    N, C, H, W = 2, 16, 16, 16
    x = jax.random.normal(k_in, (N, C, H, W), jnp.float32)
    params = init_decoder_params(k_par, C, layers_number=2)

    forward = make_decoder_forward(params, N, H, W)
    out = jax.block_until_ready(forward(x))
    assert out.shape == (N, C // 4, 4 * H, 4 * W), out.shape

    ref = decoder_ref(x, params)
    err = float(jnp.max(jnp.abs(out - ref)))
    scale = float(jnp.max(jnp.abs(ref))) + 1e-6
    # bf16 streaming path -> looser tolerance than a pure-f32 pipeline.
    assert err <= 0.03 * scale + 5e-3, (err, scale)

    print("KERNEL_OK")
</pallas_src>

<mosaic_0001>
module attributes {stable_mosaic.version = 11 : i64} {
  func.func @k(%arg0: memref<8x128xf32, #tpu.memory_space<vmem>>, %arg1: memref<8x128xf32, #tpu.memory_space<vmem>>) attributes {dimension_semantics = [], scalar_prefetch = 0 : i64, scratch_operands = 0 : i64, tpu.core_type = #tpu.core_type<tc>} {
    %c0 = arith.constant 0 : index
    %c0_0 = arith.constant 0 : index
    %0 = vector.load %arg0[%c0, %c0_0] : memref<8x128xf32, #tpu.memory_space<vmem>>, vector<8x128xf32>
    %c1_i32 = arith.constant 1 : i32
    %1 = tpu.dynamic_rotate %0 by %c1_i32 dim 1 : vector<8x128xf32>, i32 -> vector<8x128xf32>
    %c0_1 = arith.constant 0 : index
    %c0_2 = arith.constant 0 : index
    %2 = vector.load %arg1[%c0_1, %c0_2] : memref<8x128xf32, #tpu.memory_space<vmem>>, vector<8x128xf32>
    tpu.vector_store %arg1[%c0_1, %c0_2], %1 {strides = array<i32>} : memref<8x128xf32, #tpu.memory_space<vmem>>, vector<8x128xf32>,
    return
  }
}

</mosaic_0001>

<bundles_post_ra>
// kernel: tpu_custom_call.1
= control target key start
LH: loop header
LB: loop body
LE: loop exit
PB: predicated region body
PF: predicated region fallthrough
CT: control target
= control target key end

     0   :  { %6 = vsyncpa [#allocation3], 0  ;;  %s128_s0 = inlined_call_operand.hbm [shape: f32[8,128], index: 0, kind: input, shape index: {}]   ;;  %s129_s1 = inlined_call_operand.hbm [shape: f32[8,128], index: 1, kind: output, shape index: {}]  }
   0x1   :  { %7 = vsyncpa [#allocation4], 0  ;;  %s91_s6 = smov [#allocation2]   ;;  %s43_s10 = scalar_lea.hbm %s128_s0, 128 }
   0x2   :  { %s14_s7 = sshll.u32 %s91_s6, 4  ;;  %p44_p0 = scmp.ne.s32.totalorder %s128_s0, %s43_s10  ;;  %s15_s7 = int_to_ptr.vmem [resolvable:$true] %s14_s7 }
   0x3   :  { %p47_p1 = scmp.lt.u32.totalorder %s43_s10, %s128_s0 }
   0x5   :  { %p49_p2 = pnand %p47_p1, %p44_p0 }
   0x7   :  { %52 = shalt.err (!%p49_p2)
}
   0x8   :  { %s53_s15 = scalar_lea.vmem %s15_s7, 128  ;;  %p58_p4 = scmp.lt.s32.totalorder %s15_s7, %s15_s7 }
   0x9   :  { %p54_p3 = scmp.ne.s32.totalorder %s15_s7, %s53_s15  ;;  %p59_p5 = scmp.lt.s32.totalorder %s53_s15, %s53_s15 }
   0xb   :  { %p60_p6 = por %p59_p5, %p58_p4 }
   0xd   :  { %p61_p7 = pnand %p60_p6, %p54_p3 }
   0xf   :  { %64 = shalt.err (!%p61_p7)
}
  0x10   :  { %17 = dma.hbm_to_vmem [thread:$0]  %s128_s0, 128, %s15_s7, [#allocation3]  }
  0x11   :  { %87 = dma.done.wait [#allocation3], 128  }
  0x12   :  { %88 = vsyncadd [#allocation3], 4294967168  ;;  %v21_v0 = vld [vmem:[#allocation2] sm:$0xff]  ;;  %s92_s18 = smov 1   ;;  %s93_s19 = smov [#allocation5]  }
  0x13   :  { %22 = vrot.lane.b32.xlu0 %v21_v0, %s92_s18  ;;  %s31_s20 = sshll.u32 %s93_s19, 4  ;;  %s32_s20 = int_to_ptr.vmem [resolvable:$true] %s31_s20 }
  0x14   :  { %s65_s21 = scalar_lea.vmem %s32_s20, 128  ;;  %p70_p9 = scmp.lt.s32.totalorder %s32_s20, %s32_s20 }
  0x15   :  { %p66_p8 = scmp.ne.s32.totalorder %s32_s20, %s65_s21  ;;  %p71_p10 = scmp.lt.s32.totalorder %s65_s21, %s65_s21 }
  0x17   :  { %p72_p11 = por %p71_p10, %p70_p9 }
  0x19   :  { %p73_p12 = pnand %p72_p11, %p66_p8 }
  0x85   :  { %v23_v1 = vpop.permute.xlu0 %22 }
  0x86   :  { %24 = vst [vmem:[#allocation5] sm:$0xff] %v23_v1 }
  0x87   :  { %76 = shalt.err (!%p73_p12)
}
  0x88   :  { %s77_s0 = scalar_lea.hbm %s129_s1, 128 }
  0x89   :  { %p78_p13 = scmp.ne.s32.totalorder %s129_s1, %s77_s0  ;;  %p81_p0 = scmp.lt.u32.totalorder %s77_s0, %s129_s1 }
  0x8b   :  { %p83_p1 = pnand %p81_p0, %p78_p13 }
  0x8d   :  { %86 = shalt.err (!%p83_p1)
}
  0x8e   :  { %34 = dma.vmem_to_hbm [thread:$0]  %s32_s20, 128, %s129_s1, [#allocation4]  }
  0x8f   :  { %89 = dma.done.wait [#allocation4], 128  }
  0x90   :  { %90 = vsyncadd [#allocation4], 4294967168 }
  0x91   :  { %38 = vsyncpa [#allocation3], 1 }
  0x92   :  { %39 = vsyncpa [#allocation4], 1 }

</bundles_post_ra>
